<compile_context>
chip_gen: v7x
topology: tpu7x:2x2x1
jax: 0.10.0
libtpu: 0.0.40
codegen_flags: <defaults>
</compile_context>

<pallas_src>
import functools

import jax
import jax.numpy as jnp
from jax.experimental import pallas as pl
from jax.experimental.pallas import tpu as pltpu


def _round_up(x: int, m: int) -> int:
    return (x + m - 1) // m * m


def _actor_critic_kernel(x_ref, w1_ref, b1_ref, w2_ref, b2_ref,
                         wh_ref, bh_ref, out_ref, *, n_actions):
    x = x_ref[...]                                                   # (TB, F)

    # feature_net: two stacked Linear layers (no nonlinearity in the module).
    h = jnp.dot(x, w1_ref[...], preferred_element_type=jnp.float32) + b1_ref[...]
    h = h.astype(w2_ref.dtype)
    h = jnp.dot(h, w2_ref[...], preferred_element_type=jnp.float32) + b2_ref[...]
    h = h.astype(wh_ref.dtype)

    # Fused heads: one lane-dense matmul, z[:, :A]=action logits,
    # z[:, A:2A]=values, z[:, 2A:]=zero padding.
    z = jnp.dot(h, wh_ref[...], preferred_element_type=jnp.float32) + bh_ref[...]

    # Masked, numerically-stable softmax over the first n_actions lanes only.
    col = jax.lax.broadcasted_iota(jnp.int32, z.shape, 1)
    is_act = col < n_actions
    za = jnp.where(is_act, z, jnp.float32(-1e30))
    m = jnp.max(za, axis=-1, keepdims=True)
    e = jnp.exp(za - m)                       # padded lanes underflow to 0
    denom = jnp.sum(e, axis=-1, keepdims=True)
    probs = e * pl.reciprocal(denom, approx=True)

    # Single unmasked, lane-dense store of the whole slab.
    out_ref[...] = jnp.where(is_act, probs, z).astype(out_ref.dtype)


def actor_critic_forward(state, params, *, compute_dtype=jnp.float32,
                         block_b=256):
    """state: (B, n_features) f32.  params: dict of (in,out) weights / (1,out) biases.

    Returns (actions, values), each (B, n_actions) float32.
    """
    B, n_features = state.shape
    hidden = params["w1"].shape[1]
    n_actions = params["wa"].shape[1]

    # --- wrapper-side padding / head fusion (layout plumbing, not compute) ---
    F = _round_up(n_features, 128)                       # full-K first matmul
    P = _round_up(2 * n_actions, 128)                    # lane-dense head/output

    tb = min(block_b, _round_up(B, 16))                  # bf16-safe sublane tile
    padded_b = _round_up(B, tb)
    grid = (padded_b // tb,)

    x = jnp.pad(state, ((0, padded_b - B), (0, F - n_features)))
    w1 = jnp.pad(params["w1"], ((0, F - n_features), (0, 0)))
    w2 = params["w2"]
    wh = jnp.concatenate([params["wa"], params["wv"]], axis=1)       # (hidden, 2A)
    bh = jnp.concatenate([params["ba"], params["bv"]], axis=1)       # (1, 2A)
    wh = jnp.pad(wh, ((0, 0), (0, P - 2 * n_actions)))
    bh = jnp.pad(bh, ((0, 0), (0, P - 2 * n_actions)))

    # Matmul operands in compute_dtype (bf16 on v6e/v7x); biases stay f32 and
    # are added to the f32 accumulator.
    x = x.astype(compute_dtype)
    w1 = w1.astype(compute_dtype)
    w2 = w2.astype(compute_dtype)
    wh = wh.astype(compute_dtype)
    b1 = params["b1"].astype(jnp.float32)
    b2 = params["b2"].astype(jnp.float32)
    bh = bh.astype(jnp.float32)

    full = lambda shape: pl.BlockSpec(shape, lambda i: (0, 0))       # resident

    out = pl.pallas_call(
        functools.partial(_actor_critic_kernel, n_actions=n_actions),
        out_shape=jax.ShapeDtypeStruct((padded_b, P), jnp.float32),
        grid=grid,
        in_specs=[
            pl.BlockSpec((tb, F), lambda i: (i, 0)),     # state tile (pipelined)
            full((F, hidden)), full((1, hidden)),        # w1, b1
            full((hidden, hidden)), full((1, hidden)),   # w2, b2
            full((hidden, P)), full((1, P)),             # fused head w, b
        ],
        out_specs=pl.BlockSpec((tb, P), lambda i: (i, 0)),
        compiler_params=pltpu.CompilerParams(
            dimension_semantics=("parallel",)),
    )(x, w1, b1, w2, b2, wh, bh)

    actions = out[:B, :n_actions]
    values = out[:B, n_actions:2 * n_actions]
    return actions, values


def init_params(key, n_features, n_actions, hidden=256):
    """Deterministic synthetic init (uniform, PyTorch-Linear-like scale)."""
    ks = jax.random.split(key, 8)

    def lin(kw, kb, fan_in, fan_out):
        bound = 1.0 / jnp.sqrt(fan_in)
        w = jax.random.uniform(kw, (fan_in, fan_out), jnp.float32, -bound, bound)
        b = jax.random.uniform(kb, (1, fan_out), jnp.float32, -bound, bound)
        return w, b

    w1, b1 = lin(ks[0], ks[1], n_features, hidden)
    w2, b2 = lin(ks[2], ks[3], hidden, hidden)
    wa, ba = lin(ks[4], ks[5], hidden, n_actions)
    wv, bv = lin(ks[6], ks[7], hidden, n_actions)
    return {"w1": w1, "b1": b1, "w2": w2, "b2": b2,
            "wa": wa, "ba": ba, "wv": wv, "bv": bv}


def _reference(state, p):
    dot = lambda a, b: jnp.dot(a, b, precision=jax.lax.Precision.HIGHEST)
    h = dot(state, p["w1"]) + p["b1"]
    h = dot(h, p["w2"]) + p["b2"]
    logits = dot(h, p["wa"]) + p["ba"]
    actions = jax.nn.softmax(logits, axis=-1)
    values = dot(h, p["wv"]) + p["bv"]
    return actions, values


if __name__ == "__main__":
    n_features, n_actions = 32, 8
    key = jax.random.PRNGKey(0)
    k_s1, k_s2, k_p = jax.random.split(key, 3)
    params = init_params(k_p, n_features, n_actions)

    # --- small batch, f32 matmul operands: tight check vs f32 reference ---
    B1 = 8
    state = jax.random.normal(k_s1, (B1, n_features), jnp.float32)
    actions, values = actor_critic_forward(state, params,
                                           compute_dtype=jnp.float32)
    jax.block_until_ready((actions, values))
    ref_a, ref_v = _reference(state, params)
    assert actions.shape == (B1, n_actions) and values.shape == (B1, n_actions)
    assert jnp.allclose(actions, ref_a, atol=2e-3, rtol=2e-3)
    assert jnp.allclose(values, ref_v, atol=2e-3, rtol=2e-3)
    assert jnp.allclose(jnp.sum(actions, axis=-1), 1.0, atol=3e-3)

    # --- batched, bf16 matmul operands (f32 accumulation): exercises the
    #     1-D parallel batch grid with resident weights ---
    B2 = 512
    state2 = jax.random.normal(k_s2, (B2, n_features), jnp.float32)
    actions2, values2 = actor_critic_forward(state2, params,
                                             compute_dtype=jnp.bfloat16,
                                             block_b=256)
    jax.block_until_ready((actions2, values2))
    ref_a2, ref_v2 = _reference(state2, params)
    assert actions2.shape == (B2, n_actions) and values2.shape == (B2, n_actions)
    assert jnp.allclose(actions2, ref_a2, atol=5e-2, rtol=5e-2)
    assert jnp.allclose(values2, ref_v2, atol=5e-2, rtol=5e-2)

    print("KERNEL_OK")
</pallas_src>

<mosaic_0001>
module attributes {stable_mosaic.version = 11 : i64} {
  func.func @_actor_critic_kernel(%arg0: i32, %arg1: memref<16x128xf32, #tpu.memory_space<vmem>>, %arg2: memref<128x256xf32, #tpu.memory_space<vmem>>, %arg3: memref<1x256xf32, #tpu.memory_space<vmem>>, %arg4: memref<256x256xf32, #tpu.memory_space<vmem>>, %arg5: memref<1x256xf32, #tpu.memory_space<vmem>>, %arg6: memref<256x128xf32, #tpu.memory_space<vmem>>, %arg7: memref<1x128xf32, #tpu.memory_space<vmem>>, %arg8: memref<16x128xf32, #tpu.memory_space<vmem>>) attributes {dimension_semantics = [#tpu.dimension_semantics<parallel>], iteration_bounds = array<i64: 1>, scalar_prefetch = 0 : i64, scratch_operands = 0 : i64, tpu.core_type = #tpu.core_type<tc>, window_params = [{transform_indices = @transform_0, window_bounds = array<i64: 16, 128>}, {pipeline_mode = #tpu.pipeline_mode<synchronous>, transform_indices = @transform_1, window_bounds = array<i64: 128, 256>}, {pipeline_mode = #tpu.pipeline_mode<synchronous>, transform_indices = @transform_2, window_bounds = array<i64: 1, 256>}, {pipeline_mode = #tpu.pipeline_mode<synchronous>, transform_indices = @transform_3, window_bounds = array<i64: 256, 256>}, {pipeline_mode = #tpu.pipeline_mode<synchronous>, transform_indices = @transform_4, window_bounds = array<i64: 1, 256>}, {pipeline_mode = #tpu.pipeline_mode<synchronous>, transform_indices = @transform_5, window_bounds = array<i64: 256, 128>}, {pipeline_mode = #tpu.pipeline_mode<synchronous>, transform_indices = @transform_6, window_bounds = array<i64: 1, 128>}, {transform_indices = @transform_7, window_bounds = array<i64: 16, 128>}]} {
    %c0 = arith.constant 0 : index
    %c0_0 = arith.constant 0 : index
    %0 = vector.load %arg1[%c0, %c0_0] : memref<16x128xf32, #tpu.memory_space<vmem>>, vector<16x128xf32>
    %c0_1 = arith.constant 0 : index
    %c0_2 = arith.constant 0 : index
    %1 = vector.load %arg2[%c0_1, %c0_2] : memref<128x256xf32, #tpu.memory_space<vmem>>, vector<128x256xf32>
    %cst = arith.constant dense<0.000000e+00> : vector<16x256xf32>
    %2 = tpu.matmul %0, %1, %cst {dimension_numbers = #tpu.dot_dimension_numbers<[1], [0], [0], [1], [0, 0, 1, 1], [], []>} : vector<16x128xf32>, vector<128x256xf32>, vector<16x256xf32> -> vector<16x256xf32>
    %c0_3 = arith.constant 0 : index
    %c0_4 = arith.constant 0 : index
    %3 = vector.load %arg3[%c0_3, %c0_4] : memref<1x256xf32, #tpu.memory_space<vmem>>, vector<1x256xf32>
    %4 = vector.broadcast %3 : vector<1x256xf32> to vector<16x256xf32>
    %5 = arith.addf %2, %4 : vector<16x256xf32>
    %c0_5 = arith.constant 0 : index
    %c0_6 = arith.constant 0 : index
    %6 = vector.load %arg4[%c0_5, %c0_6] : memref<256x256xf32, #tpu.memory_space<vmem>>, vector<256x256xf32>
    %cst_7 = arith.constant dense<0.000000e+00> : vector<16x256xf32>
    %7 = tpu.matmul %5, %6, %cst_7 {dimension_numbers = #tpu.dot_dimension_numbers<[1], [0], [0], [1], [0, 0, 1, 1], [], []>} : vector<16x256xf32>, vector<256x256xf32>, vector<16x256xf32> -> vector<16x256xf32>
    %c0_8 = arith.constant 0 : index
    %c0_9 = arith.constant 0 : index
    %8 = vector.load %arg5[%c0_8, %c0_9] : memref<1x256xf32, #tpu.memory_space<vmem>>, vector<1x256xf32>
    %9 = vector.broadcast %8 : vector<1x256xf32> to vector<16x256xf32>
    %10 = arith.addf %7, %9 : vector<16x256xf32>
    %c0_10 = arith.constant 0 : index
    %c0_11 = arith.constant 0 : index
    %11 = vector.load %arg6[%c0_10, %c0_11] : memref<256x128xf32, #tpu.memory_space<vmem>>, vector<256x128xf32>
    %cst_12 = arith.constant dense<0.000000e+00> : vector<16x128xf32>
    %12 = tpu.matmul %10, %11, %cst_12 {dimension_numbers = #tpu.dot_dimension_numbers<[1], [0], [0], [1], [0, 0, 1, 1], [], []>} : vector<16x256xf32>, vector<256x128xf32>, vector<16x128xf32> -> vector<16x128xf32>
    %c0_13 = arith.constant 0 : index
    %c0_14 = arith.constant 0 : index
    %13 = vector.load %arg7[%c0_13, %c0_14] : memref<1x128xf32, #tpu.memory_space<vmem>>, vector<1x128xf32>
    %14 = vector.broadcast %13 : vector<1x128xf32> to vector<16x128xf32>
    %15 = arith.addf %12, %14 : vector<16x128xf32>
    %16 = tpu.iota {dimensions = array<i32: 1>} : vector<16x128xi32>
    %c8_i32 = arith.constant 8 : i32
    %17 = vector.broadcast %c8_i32 : i32 to vector<16x128xi32>
    %18 = arith.cmpi slt, %16, %17 : vector<16x128xi32>
    %cst_15 = arith.constant -1.000000e+30 : f32
    %19 = vector.broadcast %cst_15 : f32 to vector<16x128xf32>
    %20 = arith.select %18, %15, %19 : vector<16x128xi1>, vector<16x128xf32>
    %cst_16 = arith.constant dense<0xFF800000> : vector<16xf32>
    %21 = vector.multi_reduction <maximumf>, %20, %cst_16 [1] : vector<16x128xf32> to vector<16xf32>
    %22 = vector.shape_cast %21 : vector<16xf32> to vector<16x1xf32>
    %23 = vector.broadcast %22 : vector<16x1xf32> to vector<16x128xf32>
    %24 = arith.subf %20, %23 : vector<16x128xf32>
    %25 = math.exp %24 : vector<16x128xf32>
    %cst_17 = arith.constant dense<0.000000e+00> : vector<16xf32>
    %26 = vector.multi_reduction <add>, %25, %cst_17 [1] : vector<16x128xf32> to vector<16xf32>
    %27 = vector.shape_cast %26 : vector<16xf32> to vector<16x1xf32>
    %28 = tpu.reciprocal %27 {approx = true} : vector<16x1xf32> -> vector<16x1xf32>
    %29 = vector.broadcast %28 : vector<16x1xf32> to vector<16x128xf32>
    %30 = arith.mulf %25, %29 : vector<16x128xf32>
    %31 = arith.select %18, %30, %15 : vector<16x128xi1>, vector<16x128xf32>
    %c0_18 = arith.constant 0 : index
    %c0_19 = arith.constant 0 : index
    %32 = vector.load %arg8[%c0_18, %c0_19] : memref<16x128xf32, #tpu.memory_space<vmem>>, vector<16x128xf32>
    tpu.vector_store %arg8[%c0_18, %c0_19], %31 {strides = array<i32>} : memref<16x128xf32, #tpu.memory_space<vmem>>, vector<16x128xf32>,
    return
  }
  func.func @transform_0(%arg0: i32) -> (i32, i32) {
    %c0_i32 = arith.constant 0 : i32
    %c0_i32_0 = arith.constant 0 : i32
    return %arg0, %c0_i32 : i32, i32
  }
  func.func @transform_1(%arg0: i32) -> (i32, i32) {
    %c0_i32 = arith.constant 0 : i32
    %c0_i32_0 = arith.constant 0 : i32
    %c0_i32_1 = arith.constant 0 : i32
    return %c0_i32, %c0_i32_0 : i32, i32
  }
  func.func @transform_2(%arg0: i32) -> (i32, i32) {
    %c0_i32 = arith.constant 0 : i32
    %c0_i32_0 = arith.constant 0 : i32
    %c0_i32_1 = arith.constant 0 : i32
    return %c0_i32, %c0_i32_0 : i32, i32
  }
  func.func @transform_3(%arg0: i32) -> (i32, i32) {
    %c0_i32 = arith.constant 0 : i32
    %c0_i32_0 = arith.constant 0 : i32
    %c0_i32_1 = arith.constant 0 : i32
    return %c0_i32, %c0_i32_0 : i32, i32
  }
  func.func @transform_4(%arg0: i32) -> (i32, i32) {
    %c0_i32 = arith.constant 0 : i32
    %c0_i32_0 = arith.constant 0 : i32
    %c0_i32_1 = arith.constant 0 : i32
    return %c0_i32, %c0_i32_0 : i32, i32
  }
  func.func @transform_5(%arg0: i32) -> (i32, i32) {
    %c0_i32 = arith.constant 0 : i32
    %c0_i32_0 = arith.constant 0 : i32
    %c0_i32_1 = arith.constant 0 : i32
    return %c0_i32, %c0_i32_0 : i32, i32
  }
  func.func @transform_6(%arg0: i32) -> (i32, i32) {
    %c0_i32 = arith.constant 0 : i32
    %c0_i32_0 = arith.constant 0 : i32
    %c0_i32_1 = arith.constant 0 : i32
    return %c0_i32, %c0_i32_0 : i32, i32
  }
  func.func @transform_7(%arg0: i32) -> (i32, i32) {
    %c0_i32 = arith.constant 0 : i32
    %c0_i32_0 = arith.constant 0 : i32
    return %arg0, %c0_i32 : i32, i32
  }
}

</mosaic_0001>

<bundles_post_ra>
// kernel: tpu_custom_call.1
= control target key start
LH: loop header
LB: loop body
LE: loop exit
PB: predicated region body
PF: predicated region fallthrough
CT: control target
= control target key end

     0   :  { %12 = vsyncpa [#allocation3], 0  ;;  %s968_s0 = inlined_call_operand.hbm [shape: f32[16,128], index: 0, kind: input, shape index: {}]   ;;  %s969_s1 = inlined_call_operand.hbm [shape: f32[128,256], index: 1, kind: input, shape index: {}]   ;;  %s970_s2 = inlined_call_operand.vmem [shape: f32[1,256], index: 2, kind: input, shape index: {}]   ;;  %s971_s3 = inlined_call_operand.hbm [shape: f32[256,256], index: 3, kind: input, shape index: {}]   ;;  %s972_s4 = inlined_call_operand.vmem [shape: f32[1,256], index: 4, kind: input, shape index: {}]   ;;  %s973_s5 = inlined_call_operand.hbm [shape: f32[256,128], index: 5, kind: input, shape index: {}]   ;;  %s974_s6 = inlined_call_operand.vmem [shape: f32[1,128], index: 6, kind: input, shape index: {}]   ;;  %s975_s7 = inlined_call_operand.hbm [shape: f32[16,128], index: 7, kind: output, shape index: {}]  }
   0x1   :  { %13 = vsyncpa [#allocation6], 0 }
   0x2   :  { %14 = vsyncpa [#allocation9], 0 }
   0x3   :  { %15 = vsyncpa [#allocation4], 0  ;;  %s821_s24 = smov [#allocation5]   ;;  %s703_s28 = scalar_lea.hbm %s969_s1, 4096 }
   0x4   :  { %s33_s25 = sshll.u32 %s821_s24, 4  ;;  %p704_p0 = scmp.ne.s32.totalorder %s969_s1, %s703_s28  ;;  %s34_s25 = int_to_ptr.vmem [resolvable:$true] %s33_s25 }
   0x5   :  { %p707_p1 = scmp.lt.u32.totalorder %s703_s28, %s969_s1 }
   0x7   :  { %p709_p2 = pnand %p707_p1, %p704_p0 }
   0x9   :  { %712 = shalt.err (!%p709_p2)
}
   0xa   :  { %s713_s10 = scalar_lea.vmem %s34_s25, 4096  ;;  %p718_p4 = scmp.lt.s32.totalorder %s34_s25, %s34_s25 }
   0xb   :  { %p714_p3 = scmp.ne.s32.totalorder %s34_s25, %s713_s10  ;;  %p719_p5 = scmp.lt.s32.totalorder %s713_s10, %s713_s10 }
   0xd   :  { %p720_p6 = por %p719_p5, %p718_p4 }
   0xf   :  { %p721_p7 = pnand %p720_p6, %p714_p3 }
  0x11   :  { %724 = shalt.err (!%p721_p7)
}
  0x12   :  { %s822_s11 = smov 256   ;;  %s823_s12 = smov 16  }
  0x13   :  { %39 = dma.hbm_to_vmem [thread:$0]  %s969_s1, 4096, %s34_s25, [#allocation6], %s822_s11, %s822_s11, %s823_s12  }
  0x14   :  { %s824_s15 = smov [#allocation2]   ;;  %s725_s19 = scalar_lea.hbm %s968_s0, 256 }
  0x15   :  { %s21_s16 = sshll.u32 %s824_s15, 4  ;;  %p726_p8 = scmp.ne.s32.totalorder %s968_s0, %s725_s19  ;;  %s22_s16 = int_to_ptr.vmem [resolvable:$true] %s21_s16 }
  0x16   :  { %p729_p9 = scmp.lt.u32.totalorder %s725_s19, %s968_s0 }
  0x18   :  { %p731_p10 = pnand %p729_p9, %p726_p8 }
  0x1a   :  { %734 = shalt.err (!%p731_p10)
}
  0x1b   :  { %s735_s24 = scalar_lea.vmem %s22_s16, 256  ;;  %p740_p12 = scmp.lt.s32.totalorder %s22_s16, %s22_s16 }
  0x1c   :  { %p736_p11 = scmp.ne.s32.totalorder %s22_s16, %s735_s24  ;;  %p741_p13 = scmp.lt.s32.totalorder %s735_s24, %s735_s24 }
  0x1e   :  { %p742_p0 = por %p741_p13, %p740_p12 }
  0x20   :  { %p743_p1 = pnand %p742_p0, %p736_p11 }
  0x22   :  { %746 = shalt.err (!%p743_p1)
}
  0x23   :  { %s825_s1 = smov 128   ;;  %s826_s25 = smov 8  }
  0x24   :  { %27 = dma.hbm_to_vmem [thread:$0]  %s968_s0, 256, %s22_s16, [#allocation3], %s825_s1, %s825_s1, %s826_s25  }
  0x25   :  { %s827_s28 = smov [#allocation7]   ;;  %s828_s30 = smov [#allocation8]  }
  0x26   :  { %s47_s29 = sshll.u32 %s827_s28, 4  ;;  %s61_s8 = sshll.u32 %s828_s30, 4  ;;  %s48_s29 = int_to_ptr.vmem [resolvable:$true] %s47_s29  ;;  %s901_s8 = int_to_ptr.vmem [resolvable:$true] %s61_s8 }
  0x27   :  { %s747_s13 = scalar_lea.hbm %s971_s3, 8192 }
  0x28   :  { %p748_p2 = scmp.ne.s32.totalorder %s971_s3, %s747_s13  ;;  %p751_p3 = scmp.lt.u32.totalorder %s747_s13, %s971_s3 }
  0x2a   :  { %p753_p4 = pnand %p751_p3, %p748_p2 }
  0x2c   :  { %756 = shalt.err (!%p753_p4)
}
  0x2d   :  { %s757_s0 = scalar_lea.vmem %s48_s29, 8192  ;;  %p762_p6 = scmp.lt.s32.totalorder %s48_s29, %s48_s29 }
  0x2e   :  { %p758_p5 = scmp.ne.s32.totalorder %s48_s29, %s757_s0  ;;  %p763_p7 = scmp.lt.s32.totalorder %s757_s0, %s757_s0 }
  0x30   :  { %p764_p8 = por %p763_p7, %p762_p6 }
  0x32   :  { %p765_p9 = pnand %p764_p8, %p758_p5 }
  0x34   :  { %768 = shalt.err (!%p765_p9)
}
  0x35   :  { %53 = dma.hbm_to_vmem [thread:$0]  %s971_s3, 8192, %s48_s29, [#allocation6], %s822_s11, %s822_s11, %s823_s12  }
  0x36   :  { %s769_s22 = scalar_lea.hbm %s973_s5, 4096 }
  0x37   :  { %p770_p10 = scmp.ne.s32.totalorder %s973_s5, %s769_s22  ;;  %p773_p11 = scmp.lt.u32.totalorder %s769_s22, %s973_s5 }
  0x39   :  { %p775_p12 = pnand %p773_p11, %p770_p10 }
  0x3b   :  { %778 = shalt.err (!%p775_p12)
}
  0x3c   :  { %s779_s28 = scalar_lea.vmem %s901_s8, 4096  ;;  %p784_p0 = scmp.lt.s32.totalorder %s901_s8, %s901_s8 }
  0x3d   :  { %p780_p13 = scmp.ne.s32.totalorder %s901_s8, %s779_s28  ;;  %p785_p1 = scmp.lt.s32.totalorder %s779_s28, %s779_s28 }
  0x3f   :  { %p786_p2 = por %p785_p1, %p784_p0 }
  0x41   :  { %p787_p3 = pnand %p786_p2, %p780_p13 }
  0x43   :  { %790 = shalt.err (!%p787_p3)
}
  0x44   :  { %67 = dma.hbm_to_vmem [thread:$0]  %s973_s5, 4096, %s901_s8, [#allocation9], %s825_s1, %s825_s1, %s826_s25  }
  0x45   :  { %813 = dma.done.wait [#allocation3], 256  }
  0x46   :  { %814 = vsyncadd [#allocation3], 4294967040 }
  0x47   :  { %815 = dma.done.wait [#allocation6], 12288  }
  0x48   :  { %816 = vsyncadd [#allocation6], 4294955008 }
  0x49   :  { %817 = dma.done.wait [#allocation9], 4096  }
  0x4a   :  { %818 = vsyncadd [#allocation9], 4294963200  ;;  %v829_v0 = vmov 0.0   ;;  %v85_v1 = vld [vmem:[#allocation5 + $0x8] sm:$0xff]  ;;  %v87_v2 = vld [vmem:[#allocation5 + $0x18] sm:$0xff] }
  0x4b   :  { %192 = vmatprep.mubr.f32.mxu0 %v829_v0  ;;  %v84_v3 = vld [vmem:[#allocation5] sm:$0xff]  ;;  %v557_v4 = vpack.c.bf16 %v87_v2, %v85_v1  ;;  %v86_v5 = vld [vmem:[#allocation5 + $0x10] sm:$0xff]  ;;  %v89_v6 = vld [vmem:[#allocation5 + $0x28] sm:$0xff] }
  0x4c   :  { %v91_v7 = vld [vmem:[#allocation5 + $0x38] sm:$0xff]  ;;  %v559_v8 = vpack.c.bf16 %v86_v5, %v84_v3  ;;  %v88_v10 = vld [vmem:[#allocation5 + $0x20] sm:$0xff]  ;;  %v90_v11 = vld [vmem:[#allocation5 + $0x30] sm:$0xff] }
  0x4d   :  { %v561_v9 = vpack.c.bf16 %v91_v7, %v89_v6  ;;  %v93_v12 = vld [vmem:[#allocation5 + $0x48] sm:$0xff]  ;;  %558 = vmatprep.subr.bf16.mxu0 %v557_v4  ;;  %v95_v13 = vld [vmem:[#allocation5 + $0x58] sm:$0xff]  ;;  %v563_v14 = vpack.c.bf16 %v90_v11, %v88_v10  ;;  %v92_v16 = vld [vmem:[#allocation5 + $0x40] sm:$0xff] }
  0x4e   :  { %560 = vmatpush1.bf16.msra.mxu0 %v559_v8  ;;  %v565_v15 = vpack.c.bf16 %v95_v13, %v93_v12  ;;  %v94_v17 = vld [vmem:[#allocation5 + $0x50] sm:$0xff]  ;;  %v97_v18 = vld [vmem:[#allocation5 + $0x68] sm:$0xff]  ;;  %v99_v19 = vld [vmem:[#allocation5 + $0x78] sm:$0xff] }
  0x4f   :  { %562 = vmatprep.subr.bf16.mxu0 %v561_v9  ;;  %v567_v20 = vpack.c.bf16 %v94_v17, %v92_v16  ;;  %v569_v21 = vpack.c.bf16 %v99_v19, %v97_v18  ;;  %v96_v22 = vld [vmem:[#allocation5 + $0x60] sm:$0xff]  ;;  %v98_v23 = vld [vmem:[#allocation5 + $0x70] sm:$0xff]  ;;  %v101_v24 = vld [vmem:[#allocation5 + $0x88] sm:$0xff] }
  0x50   :  { %v103_v25 = vld [vmem:[#allocation5 + $0x98] sm:$0xff]  ;;  %v100_v26 = vld [vmem:[#allocation5 + $0x80] sm:$0xff]  ;;  %v102_v27 = vld [vmem:[#allocation5 + $0x90] sm:$0xff]  ;;  %v571_v30 = vpack.c.bf16 %v98_v23, %v96_v22 }
  0x51   :  { %v206_v28 = vld [vmem:[#allocation7 + $0x8] sm:$0xff]  ;;  %v208_v29 = vld [vmem:[#allocation7 + $0x18] sm:$0xff]  ;;  %v205_v33 = vld [vmem:[#allocation7] sm:$0xff]  ;;  %v573_v36 = vpack.c.bf16 %v103_v25, %v101_v24  ;;  %v575_v46 = vpack.c.bf16 %v102_v27, %v100_v26 }
  0x52   :  { %564 = vmatpush1.bf16.msra.mxu0 %v563_v14  ;;  %v105_v31 = vld [vmem:[#allocation5 + $0xa8] sm:$0xff]  ;;  %v589_v32 = vpack.c.bf16 %v208_v29, %v206_v28  ;;  %v207_v34 = vld [vmem:[#allocation7 + $0x10] sm:$0xff]  ;;  %v212_v38 = vld [vmem:[#allocation7 + $0x38] sm:$0xff] }
  0x53   :  { %566 = vmatprep.subr.bf16.mxu0 %v565_v15  ;;  %v210_v35 = vld [vmem:[#allocation7 + $0x28] sm:$0xff]  ;;  %v591_v37 = vpack.c.bf16 %v207_v34, %v205_v33  ;;  %v209_v39 = vld [vmem:[#allocation7 + $0x20] sm:$0xff]  ;;  %v211_v40 = vld [vmem:[#allocation7 + $0x30] sm:$0xff] }
  0x54   :  { %v107_v41 = vld [vmem:[#allocation5 + $0xb8] sm:$0xff]  ;;  %590 = vmatprep.subr.bf16.mxu1 %v589_v32  ;;  %v593_v42 = vpack.c.bf16 %v212_v38, %v210_v35  ;;  %v214_v43 = vld [vmem:[#allocation7 + $0x48] sm:$0xff]  ;;  %v595_v45 = vpack.c.bf16 %v211_v40, %v209_v39  ;;  %v104_v47 = vld [vmem:[#allocation5 + $0xa0] sm:$0xff] }
  0x55   :  { %v216_v44 = vld [vmem:[#allocation7 + $0x58] sm:$0xff]  ;;  %592 = vmatpush1.bf16.msra.mxu1 %v591_v37  ;;  %v213_v49 = vld [vmem:[#allocation7 + $0x40] sm:$0xff]  ;;  %v215_v50 = vld [vmem:[#allocation7 + $0x50] sm:$0xff]  ;;  %v577_v51 = vpack.c.bf16 %v107_v41, %v105_v31 }
  0x56   :  { %568 = vmatpush1.bf16.msra.mxu0 %v567_v20  ;;  %594 = vmatprep.subr.bf16.mxu1 %v593_v42  ;;  %v597_v48 = vpack.c.bf16 %v216_v44, %v214_v43  ;;  %v106_v52 = vld [vmem:[#allocation5 + $0xb0] sm:$0xff]  ;;  %v218_v53 = vld [vmem:[#allocation7 + $0x68] sm:$0xff]  ;;  %v220_v54 = vld [vmem:[#allocation7 + $0x78] sm:$0xff]  ;;  %v599_v57 = vpack.c.bf16 %v215_v50, %v213_v49 }
  0x57   :  { %570 = vmatprep.subr.bf16.mxu0 %v569_v21  ;;  %v109_v55 = vld [vmem:[#allocation5 + $0xc8] sm:$0xff]  ;;  %v111_v56 = vld [vmem:[#allocation5 + $0xd8] sm:$0xff]  ;;  %v579_v58 = vpack.c.bf16 %v106_v52, %v104_v47  ;;  %v108_v59 = vld [vmem:[#allocation5 + $0xc0] sm:$0xff]  ;;  %v601_v60 = vpack.c.bf16 %v220_v54, %v218_v53 }
  0x58   :  { %v217_v61 = vld [vmem:[#allocation7 + $0x60] sm:$0xff]  ;;  %v219_v62 = vld [vmem:[#allocation7 + $0x70] sm:$0xff]  ;;  %v581_v63 = vpack.c.bf16 %v111_v56, %v109_v55  ;;  %v222_v2 = vld [vmem:[#allocation7 + $0x88] sm:$0xff] }
  0x59   :  { %596 = vmatpush1.bf16.msra.mxu1 %v595_v45  ;;  %v110_v1 = vld [vmem:[#allocation5 + $0xd0] sm:$0xff]  ;;  %v224_v3 = vld [vmem:[#allocation7 + $0x98] sm:$0xff]  ;;  %v113_v4 = vld [vmem:[#allocation5 + $0xe8] sm:$0xff]  ;;  %v603_v6 = vpack.c.bf16 %v219_v62, %v217_v61 }
  0x5a   :  { %572 = vmatpush1.bf16.msra.mxu0 %v571_v30  ;;  %598 = vmatprep.subr.bf16.mxu1 %v597_v48  ;;  %v115_v5 = vld [vmem:[#allocation5 + $0xf8] sm:$0xff]  ;;  %v583_v7 = vpack.c.bf16 %v110_v1, %v108_v59  ;;  %v112_v8 = vld [vmem:[#allocation5 + $0xe0] sm:$0xff]  ;;  %v605_v9 = vpack.c.bf16 %v224_v3, %v222_v2  ;;  %v223_v11 = vld [vmem:[#allocation7 + $0x90] sm:$0xff] }
  0x5b   :  { %574 = vmatprep.subr.bf16.mxu0 %v573_v36  ;;  %v221_v10 = vld [vmem:[#allocation7 + $0x80] sm:$0xff]  ;;  %v585_v12 = vpack.c.bf16 %v115_v5, %v113_v4  ;;  %v114_v13 = vld [vmem:[#allocation5 + $0xf0] sm:$0xff]  ;;  %v226_v14 = vld [vmem:[#allocation7 + $0xa8] sm:$0xff] }
  0x5c   :  { %v228_v15 = vld [vmem:[#allocation7 + $0xb8] sm:$0xff]  ;;  %v607_v16 = vpack.c.bf16 %v223_v11, %v221_v10  ;;  %v587_v17 = vpack.c.bf16 %v114_v13, %v112_v8  ;;  %v225_v19 = vld [vmem:[#allocation7 + $0xa0] sm:$0xff]  ;;  %v227_v20 = vld [vmem:[#allocation7 + $0xb0] sm:$0xff] }
  0x5d   :  { %600 = vmatpush1.bf16.msra.mxu1 %v599_v57  ;;  %v609_v18 = vpack.c.bf16 %v228_v15, %v226_v14  ;;  %v230_v21 = vld [vmem:[#allocation7 + $0xc8] sm:$0xff]  ;;  %v232_v22 = vld [vmem:[#allocation7 + $0xd8] sm:$0xff]  ;;  %v611_v23 = vpack.c.bf16 %v227_v20, %v225_v19  ;;  %v82_v24 = vld [vmem:[#allocation2] sm:$0xff] }
  0x5e   :  { %576 = vmatpush1.bf16.msra.mxu0 %v575_v46  ;;  %602 = vmatprep.subr.bf16.mxu1 %v601_v60  ;;  %v613_v25 = vpack.c.bf16 %v232_v22, %v230_v21  ;;  %v229_v26 = vld [vmem:[#allocation7 + $0xc0] sm:$0xff]  ;;  %v231_v27 = vld [vmem:[#allocation7 + $0xd0] sm:$0xff]  ;;  %v234_v28 = vld [vmem:[#allocation7 + $0xe8] sm:$0xff] }
  0x5f   :  { %578 = vmatprep.subr.bf16.mxu0 %v577_v51  ;;  %v236_v29 = vld [vmem:[#allocation7 + $0xf8] sm:$0xff]  ;;  %v615_v30 = vpack.c.bf16 %v231_v27, %v229_v26  ;;  %v233_v33 = vld [vmem:[#allocation7 + $0xe0] sm:$0xff]  ;;  %v235_v34 = vld [vmem:[#allocation7 + $0xf0] sm:$0xff] }
  0x60   :  { %v83_v31 = vld [vmem:[#allocation2 + $0x8] sm:$0xff]  ;;  %v617_v32 = vpack.c.bf16 %v236_v29, %v234_v28  ;;  %v238_v35 = vld [vmem:[#allocation7 + $0x108] sm:$0xff]  ;;  %v619_v37 = vpack.c.bf16 %v235_v34, %v233_v33  ;;  %v237_v39 = vld [vmem:[#allocation7 + $0x100] sm:$0xff] }
  0x61   :  { %604 = vmatpush1.bf16.msra.mxu1 %v603_v6  ;;  %v240_v36 = vld [vmem:[#allocation7 + $0x118] sm:$0xff]  ;;  %v239_v40 = vld [vmem:[#allocation7 + $0x110] sm:$0xff]  ;;  %v242_v41 = vld [vmem:[#allocation7 + $0x128] sm:$0xff] }
  0x62   :  { %580 = vmatpush1.bf16.msra.mxu0 %v579_v58  ;;  %606 = vmatprep.subr.bf16.mxu1 %v605_v9  ;;  %v621_v38 = vpack.c.bf16 %v240_v36, %v238_v35  ;;  %v244_v42 = vld [vmem:[#allocation7 + $0x138] sm:$0xff]  ;;  %v623_v43 = vpack.c.bf16 %v239_v40, %v237_v39  ;;  %v241_v44 = vld [vmem:[#allocation7 + $0x120] sm:$0xff]  ;;  %v243_v45 = vld [vmem:[#allocation7 + $0x130] sm:$0xff] }
  0x63   :  { %582 = vmatprep.subr.bf16.mxu0 %v581_v63  ;;  %v246_v46 = vld [vmem:[#allocation7 + $0x148] sm:$0xff]  ;;  %v248_v47 = vld [vmem:[#allocation7 + $0x158] sm:$0xff]  ;;  %v627_v48 = vpack.c.bf16 %v243_v45, %v241_v44  ;;  %v245_v50 = vld [vmem:[#allocation7 + $0x140] sm:$0xff] }
  0x64   :  { %v629_v49 = vpack.c.bf16 %v248_v47, %v246_v46  ;;  %v247_v51 = vld [vmem:[#allocation7 + $0x150] sm:$0xff]  ;;  %v250_v52 = vld [vmem:[#allocation7 + $0x168] sm:$0xff]  ;;  %v252_v53 = vld [vmem:[#allocation7 + $0x178] sm:$0xff] }
  0x65   :  { %608 = vmatpush1.bf16.msra.mxu1 %v607_v16  ;;  %v631_v54 = vpack.c.bf16 %v247_v51, %v245_v50  ;;  %v633_v55 = vpack.c.bf16 %v252_v53, %v250_v52  ;;  %v249_v56 = vld [vmem:[#allocation7 + $0x160] sm:$0xff]  ;;  %v251_v57 = vld [vmem:[#allocation7 + $0x170] sm:$0xff]  ;;  %v254_v58 = vld [vmem:[#allocation7 + $0x188] sm:$0xff] }
  0x66   :  { %584 = vmatpush1.bf16.msra.mxu0 %v583_v7  ;;  %610 = vmatprep.subr.bf16.mxu1 %v609_v18  ;;  %v256_v59 = vld [vmem:[#allocation7 + $0x198] sm:$0xff]  ;;  %v635_v60 = vpack.c.bf16 %v251_v57, %v249_v56  ;;  %v253_v62 = vld [vmem:[#allocation7 + $0x180] sm:$0xff]  ;;  %v255_v63 = vld [vmem:[#allocation7 + $0x190] sm:$0xff] }
  0x67   :  { %586 = vmatprep.subr.bf16.mxu0 %v585_v12  ;;  %v637_v61 = vpack.c.bf16 %v256_v59, %v254_v58  ;;  %v258_v1 = vld [vmem:[#allocation7 + $0x1a8] sm:$0xff]  ;;  %v260_v2 = vld [vmem:[#allocation7 + $0x1b8] sm:$0xff]  ;;  %v639_v3 = vpack.c.bf16 %v255_v63, %v253_v62  ;;  %v257_v5 = vld [vmem:[#allocation7 + $0x1a0] sm:$0xff] }
  0x68   :  { %v641_v4 = vpack.c.bf16 %v260_v2, %v258_v1  ;;  %v259_v6 = vld [vmem:[#allocation7 + $0x1b0] sm:$0xff]  ;;  %v262_v7 = vld [vmem:[#allocation7 + $0x1c8] sm:$0xff]  ;;  %v264_v8 = vld [vmem:[#allocation7 + $0x1d8] sm:$0xff] }
  0x69   :  { %612 = vmatpush1.bf16.msra.mxu1 %v611_v23  ;;  %v643_v9 = vpack.c.bf16 %v259_v6, %v257_v5  ;;  %v645_v10 = vpack.c.bf16 %v264_v8, %v262_v7  ;;  %v261_v11 = vld [vmem:[#allocation7 + $0x1c0] sm:$0xff]  ;;  %v263_v12 = vld [vmem:[#allocation7 + $0x1d0] sm:$0xff]  ;;  %v266_v14 = vld [vmem:[#allocation7 + $0x1e8] sm:$0xff] }
  0x6a   :  { %588 = vmatpush1.bf16.msra.mxu0 %v587_v17  ;;  %614 = vmatprep.subr.bf16.mxu1 %v613_v25  ;;  %v647_v13 = vpack.c.bf16 %v263_v12, %v261_v11  ;;  %v268_v15 = vld [vmem:[#allocation7 + $0x1f8] sm:$0xff]  ;;  %v265_v17 = vld [vmem:[#allocation7 + $0x1e0] sm:$0xff]  ;;  %v267_v18 = vld [vmem:[#allocation7 + $0x1f0] sm:$0xff] }
  0x6b   :  { %v649_v16 = vpack.c.bf16 %v268_v15, %v266_v14  ;;  %v651_v19 = vpack.c.bf16 %v267_v18, %v265_v17  ;;  %v374_v20 = vld [vmem:[#allocation8 + $0x80] sm:$0xff]  ;;  %v375_v21 = vld [vmem:[#allocation8 + $0x88] sm:$0xff]  ;;  %v376_v25 = vld [vmem:[#allocation8 + $0x90] sm:$0xff] }
  0x6c   :  { %v358_v22 = vld [vmem:[#allocation8] sm:$0xff]  ;;  %v653_v23 = vpack.c.bf16 %v375_v21, %v374_v20  ;;  %v377_v26 = vld [vmem:[#allocation8 + $0x98] sm:$0xff]  ;;  %v360_v29 = vld [vmem:[#allocation8 + $0x10] sm:$0xff] }
  0x6d   :  { %193 = vmatmul.mubr.f32.vlgmr.msra.gmra.mrb[0].mxu0 %v82_v24  ;;  %616 = vmatpush1.bf16.msra.mxu1 %v615_v30  ;;  %v359_v24 = vld [vmem:[#allocation8 + $0x8] sm:$0xff]  ;;  %v657_v28 = vpack.c.bf16 %v377_v26, %v376_v25  ;;  %v361_v30 = vld [vmem:[#allocation8 + $0x18] sm:$0xff]  ;;  %v362_v35 = vld [vmem:[#allocation8 + $0x20] sm:$0xff] }
  0x6e   :  { %198 = vmatprep.mubr.f32.mxu0 %v829_v0  ;;  %618 = vmatprep.subr.bf16.mxu1 %v617_v32  ;;  %v625_v0 = vpack.c.bf16 %v244_v42, %v242_v41  ;;  %v655_v27 = vpack.c.bf16 %v359_v24, %v358_v22  ;;  %v379_v32 = vld [vmem:[#allocation8 + $0xa8] sm:$0xff]  ;;  %v659_v33 = vpack.c.bf16 %v361_v30, %v360_v29  ;;  %v364_v41 = vld [vmem:[#allocation8 + $0x30] sm:$0xff]  ;;  %v365_v42 = vld [vmem:[#allocation8 + $0x38] sm:$0xff] }
  0x6f   :  { %654 = vmatprep.subr.bf16.mxu0 %v653_v23  ;;  %v363_v36 = vld [vmem:[#allocation8 + $0x28] sm:$0xff]  ;;  %v667_v44 = vpack.c.bf16 %v365_v42, %v364_v41  ;;  %v366_v46 = vld [vmem:[#allocation8 + $0x40] sm:$0xff]  ;;  %v368_v52 = vld [vmem:[#allocation8 + $0x50] sm:$0xff] }
  0x70   :  { %656 = vmatpush3.bf16.msra.mxu0 %v655_v27  ;;  %v663_v39 = vpack.c.bf16 %v363_v36, %v362_v35  ;;  %v367_v47 = vld [vmem:[#allocation8 + $0x48] sm:$0xff]  ;;  %v369_v53 = vld [vmem:[#allocation8 + $0x58] sm:$0xff]  ;;  %v370_v58 = vld [vmem:[#allocation8 + $0x60] sm:$0xff] }
  0x71   :  { %199 = vmatmul.mubr.f32.gmra.mrb[2].mxu0 %v83_v31  ;;  %620 = vmatpush1.bf16.msra.mxu1 %v619_v37  ;;  %v378_v31 = vld [vmem:[#allocation8 + $0xa0] sm:$0xff]  ;;  %v380_v37 = vld [vmem:[#allocation8 + $0xb0] sm:$0xff]  ;;  %v671_v50 = vpack.c.bf16 %v367_v47, %v366_v46  ;;  %v675_v56 = vpack.c.bf16 %v369_v53, %v368_v52  ;;  %v371_v59 = vld [vmem:[#allocation8 + $0x68] sm:$0xff] }
  0x72   :  { %622 = vmatprep.subr.bf16.mxu1 %v621_v38  ;;  %658 = vmatprep.subr.bf16.mxu0 %v657_v28  ;;  %v661_v34 = vpack.c.bf16 %v379_v32, %v378_v31  ;;  %v381_v38 = vld [vmem:[#allocation8 + $0xb8] sm:$0xff]  ;;  %v116_v1 = vld [vmem:[%s970_s2] sm:$0x3] }
  0x73   :  { %v665_v40 = vpack.c.bf16 %v381_v38, %v380_v37  ;;  %v389_v14 = vld [vmem:[#allocation8 + $0xf8] sm:$0xff] }
  0x74   :  { %660 = vmatpush3.bf16.msra.mxu0 %v659_v33  ;;  %v373_v17 = vld [vmem:[#allocation8 + $0x78] sm:$0xff]  ;;  %v518_v33 = vld [vmem:[%s974_s6] ss:$0 sm:$0xff] }
  0x75   :  { %624 = vmatpush1.bf16.msra.mxu1 %v623_v43  ;;  %662 = vmatprep.subr.bf16.mxu0 %v661_v34  ;;  %v382_v43 = vld [vmem:[#allocation8 + $0xc0] sm:$0xff] }
  0x76   :  { %626 = vmatprep.subr.bf16.mxu1 %v625_v0  ;;  %v383_v0 = vld [vmem:[#allocation8 + $0xc8] sm:$0xff] }
  0x77   :  { %v669_v45 = vpack.c.bf16 %v383_v0, %v382_v43 }
  0x78   :  { %664 = vmatpush3.bf16.msra.mxu0 %v663_v39 }
  0x79   :  { %628 = vmatpush1.bf16.msra.mxu1 %v627_v48  ;;  %666 = vmatprep.subr.bf16.mxu0 %v665_v40  ;;  %v384_v48 = vld [vmem:[#allocation8 + $0xd0] sm:$0xff] }
  0x7a   :  { %630 = vmatprep.subr.bf16.mxu1 %v629_v49  ;;  %v385_v49 = vld [vmem:[#allocation8 + $0xd8] sm:$0xff] }
  0x7b   :  { %v673_v51 = vpack.c.bf16 %v385_v49, %v384_v48 }
  0x7c   :  { %668 = vmatpush3.bf16.msra.mxu0 %v667_v44 }
  0x7d   :  { %632 = vmatpush1.bf16.msra.mxu1 %v631_v54  ;;  %670 = vmatprep.subr.bf16.mxu0 %v669_v45  ;;  %v386_v54 = vld [vmem:[#allocation8 + $0xe0] sm:$0xff] }
  0x7e   :  { %634 = vmatprep.subr.bf16.mxu1 %v633_v55  ;;  %v387_v55 = vld [vmem:[#allocation8 + $0xe8] sm:$0xff] }
  0x7f   :  { %v677_v57 = vpack.c.bf16 %v387_v55, %v386_v54 }
  0x80   :  { %672 = vmatpush3.bf16.msra.mxu0 %v671_v50 }
  0x81   :  { %636 = vmatpush1.bf16.msra.mxu1 %v635_v60  ;;  %674 = vmatprep.subr.bf16.mxu0 %v673_v51  ;;  %v679_v60 = vpack.c.bf16 %v371_v59, %v370_v58 }
  0x82   :  { %638 = vmatprep.subr.bf16.mxu1 %v637_v61  ;;  %v118_v61 = vlaneseq }
  0x84   :  { %676 = vmatpush3.bf16.msra.mxu0 %v675_v56  ;;  %v119_v62 = vshrl.u32 %v118_v61, 7  ;;  %v473_v30 = vand.u32 127, %v118_v61 }
  0x85   :  { %640 = vmatpush1.bf16.msra.mxu1 %v639_v3  ;;  %678 = vmatprep.subr.bf16.mxu0 %v677_v57 }
  0x86   :  { %642 = vmatprep.subr.bf16.mxu1 %v641_v4  ;;  %v124_v63 = vsub.s32 1, %v119_v62  ;;  %v120_v2 = vsub.s32 0, %v119_v62  ;;  %vm474_vm0 = vcmp.lt.s32.totalorder %v473_v30, 8 }
  0x88   :  { %680 = vmatpush3.bf16.msra.mxu0 %v679_v60  ;;  %v125_v3 = vrot.slane %v116_v1, %v124_v63  ;;  %v121_v4 = vrot.slane %v116_v1, %v120_v2 }
  0x89   :  { %644 = vmatpush1.bf16.msra.mxu1 %v643_v9 }
  0x8a   :  { %646 = vmatprep.subr.bf16.mxu1 %v645_v10 }
  0x8d   :  { %648 = vmatpush1.bf16.msra.mxu1 %v647_v13  ;;  %v388_v13 = vld [vmem:[#allocation8 + $0xf0] sm:$0xff] }
  0x8e   :  { %650 = vmatprep.subr.bf16.mxu1 %v649_v16  ;;  %v681_v15 = vpack.c.bf16 %v389_v14, %v388_v13  ;;  %v372_v16 = vld [vmem:[#allocation8 + $0x70] sm:$0xff] }
  0x8f   :  { %v683_v18 = vpack.c.bf16 %v373_v17, %v372_v16 }
  0x90   :  { %682 = vmatprep.subr.bf16.mxu0 %v681_v15 }
  0x91   :  { %652 = vmatpush1.bf16.msra.mxu1 %v651_v19  ;;  %684 = vmatpush3.bf16.msra.mxu0 %v683_v18  ;;  %v269_v19 = vld [vmem:[%s972_s4] sm:$0x3]  ;;  %s830_s4 = smov [#allocation10]  }
  0x92   :  { %v278_v20 = vrot.slane %v269_v19, %v124_v63  ;;  %v274_v21 = vrot.slane %v269_v19, %v120_v2  ;;  %s504_s6 = sshll.u32 %s830_s4, 4  ;;  %s505_s6 = int_to_ptr.vmem [resolvable:$true] %s504_s6 }
  0x93   :  { %s791_s9 = scalar_lea.vmem %s505_s6, 256  ;;  %p796_p5 = scmp.lt.s32.totalorder %s505_s6, %s505_s6 }
  0x94   :  { %p792_p4 = scmp.ne.s32.totalorder %s505_s6, %s791_s9  ;;  %p797_p6 = scmp.lt.s32.totalorder %s791_s9, %s791_s9 }
  0x96   :  { %p798_p7 = por %p797_p6, %p796_p5 }
  0x98   :  { %p799_p8 = pnand %p798_p7, %p792_p4 }
 0x140   :  { %v194_v5 = vpop.f32.mrb[0].mxu0 }
 0x141   :  { %v196_v6 = vpop.f32.mrb[1].mxu0  ;;  %v195_v8 = vadd.f32 %v194_v5, %v121_v4 }
 0x142   :  { %v197_v7 = vadd.f32 %v196_v6, %v125_v3 }
 0x144   :  { %v200_v9 = vpop.f32.mrb[2].mxu0  ;;  %345 = vmatprep.mubr.f32.mxu1 %v197_v7 }
 0x145   :  { %v202_v10 = vpop.f32.mrb[3].mxu0  ;;  %346 = vmatmul.mubr.f32.vlgmr.msra.gmra.mrb[0].mxu1 %v195_v8  ;;  %v201_v12 = vadd.f32 %v200_v9, %v121_v4 }
 0x146   :  { %v203_v11 = vadd.f32 %v202_v10, %v125_v3 }
 0x148   :  { %351 = vmatprep.mubr.f32.mxu1 %v203_v11 }
 0x149   :  { %352 = vmatmul.mubr.f32.gmra.mrb[2].mxu1 %v201_v12 }
 0x218   :  { %v347_v22 = vpop.f32.mrb[0].mxu1 }
 0x219   :  { %v349_v23 = vpop.f32.mrb[1].mxu1  ;;  %v348_v25 = vadd.f32 %v347_v22, %v274_v21 }
 0x21a   :  { %v350_v24 = vadd.f32 %v349_v23, %v278_v20 }
 0x21c   :  { %v353_v26 = vpop.f32.mrb[2].mxu1  ;;  %461 = vmatprep.mubr.f32.mxu0 %v350_v24 }
 0x21d   :  { %v355_v27 = vpop.f32.mrb[3].mxu1  ;;  %462 = vmatmul.mubr.f32.vlgmr.msra.gmra.mrb[4].mxu0 %v348_v25  ;;  %v354_v29 = vadd.f32 %v353_v26, %v274_v21 }
 0x21e   :  { %v356_v28 = vadd.f32 %v355_v27, %v278_v20 }
 0x220   :  { %466 = vmatprep.mubr.f32.mxu0 %v356_v28 }
 0x221   :  { %467 = vmatmul.mubr.f32.gmra.mrb[6].mxu0 %v354_v29 }
 0x2f0   :  { %v551_v31 = vpop.f32.mrb[4].mxu0 }
 0x2f1   :  { %v552_v32 = vpop.f32.mrb[5].mxu0 }
 0x2f2   :  { %v553_v34 = vadd.f32 %v552_v32, %v551_v31 }
 0x2f4   :  { %v554_v35 = vpop.f32.mrb[6].mxu0  ;;  %v464_v36 = vadd.f32 %v553_v34, %v518_v33 }
 0x2f5   :  { %v555_v37 = vpop.f32.mrb[7].mxu0 }
 0x2f6   :  { %v556_v38 = vadd.f32 %v555_v37, %v554_v35  ;;  %v475_v39 = vsel %vm474_vm0, %v464_v36, -1e+30 }
 0x2f7   :  { %477 = vmax.xlane.f32.xlu0 %v475_v39 }
 0x2f8   :  { %v469_v40 = vadd.f32 %v556_v38, %v518_v33 }
 0x2fa   :  { %v476_v41 = vsel %vm474_vm0, %v469_v40, -1e+30 }
 0x2fb   :  { %479 = vmax.xlane.f32.xlu0 %v476_v41 }
 0x384   :  { %v478_v42 = vpop.xlane.xlu0 %477 }
 0x385   :  { %v481_v43 = vsub.f32 %v475_v39, %v478_v42 }
 0x387   :  { %v483_v0 = vmul.f32 1.442695, %v481_v43 }
 0x388   :  { %v480_v44 = vpop.xlane.xlu0 %479 }
 0x389   :  { %695 = vpow2.f32 %v483_v0  ;;  %v482_v45 = vsub.f32 %v476_v41, %v480_v44 }
 0x38b   :  { %v485_v46 = vmul.f32 1.442695, %v482_v45 }
 0x38d   :  { %697 = vpow2.f32 %v485_v46 }
 0x393   :  { %v696_v47 = vpop.eup %695 }
 0x394   :  { %487 = vadd.xlane.f32.xlu1 %v696_v47 }
 0x397   :  { %v698_v48 = vpop.eup %697 }
 0x398   :  { %489 = vadd.xlane.f32.xlu1 %v698_v48 }
 0x421   :  { %v488_v49 = vpop.xlane.xlu1 %487 }
 0x422   :  { %699 = vrcp.f32 %v488_v49 }
 0x425   :  { %v490_v50 = vpop.xlane.xlu1 %489 }
 0x426   :  { %701 = vrcp.f32 %v490_v50 }
 0x42c   :  { %v700_v51 = vpop.eup %699 }
 0x42d   :  { %v493_v52 = vmul.f32 %v700_v51, %v696_v47 }
 0x42f   :  { %v495_v53 = vsel %vm474_vm0, %v493_v52, %v464_v36 }
 0x430   :  { %v702_v54 = vpop.eup %701  ;;  %497 = vst [vmem:[#allocation10] sm:$0xff] %v495_v53 }
 0x431   :  { %v494_v55 = vmul.f32 %v702_v54, %v698_v48 }
 0x433   :  { %v496_v56 = vsel %vm474_vm0, %v494_v55, %v469_v40 }
 0x434   :  { %498 = vst [vmem:[#allocation10 + $0x8] sm:$0xff] %v496_v56 }
 0x435   :  { %802 = shalt.err (!%p799_p8)
}
 0x436   :  { %s803_s14 = scalar_lea.hbm %s975_s7, 256 }
 0x437   :  { %p804_p9 = scmp.ne.s32.totalorder %s975_s7, %s803_s14  ;;  %p807_p10 = scmp.lt.u32.totalorder %s803_s14, %s975_s7 }
 0x439   :  { %p809_p11 = pnand %p807_p10, %p804_p9 }
 0x43b   :  { %812 = shalt.err (!%p809_p11)
}
 0x43c   :  { %510 = dma.vmem_to_hbm [thread:$0]  %s505_s6, 256, %s975_s7, [#allocation4], %s825_s1, %s825_s1, %s826_s25  }
 0x43d   :  { %819 = dma.done.wait [#allocation4], 256  }
 0x43e   :  { %820 = vsyncadd [#allocation4], 4294967040 }
 0x43f   :  { %514 = vsyncpa [#allocation3], 1 }
 0x440   :  { %515 = vsyncpa [#allocation6], 1 }
 0x441   :  { %516 = vsyncpa [#allocation9], 1 }
 0x442   :  { %517 = vsyncpa [#allocation4], 1 }

</bundles_post_ra>
